<compile_context>
chip_gen: v7x
topology: tpu7x:2x2x1
jax: 0.10.0
libtpu: 0.0.40
codegen_flags: <defaults>
</compile_context>

<pallas_src>
import functools

import jax
import jax.numpy as jnp
from jax.experimental import pallas as pl
from jax.experimental.pallas import tpu as pltpu


# ---------------------------------------------------------------------------
# Kernel
# ---------------------------------------------------------------------------
def _ltq_kernel(scale_ref, x_ref, o_ref, *, valmin, valmax):
    """Elementwise fake-quant: round(clip(x * (1/s), lo, hi)) * s."""
    s = scale_ref[0]        # step_size
    inv_s = scale_ref[1]    # 1/step_size precomputed on host -> VALU mul, not EUP div
    rt = x_ref[...].astype(jnp.float32) * inv_s
    x_clip = jnp.clip(rt, valmin, valmax)
    # jnp.round matches torch.round (round half-to-even).
    # NOTE(v7x): if the bundle ever shows VALU saturating, jnp.round can be
    # replaced by the f32 magic-constant trick (x + 1.5*2**23 - 1.5*2**23),
    # valid since |x_clip| <= 2**(a_bits-1) << 2**23.  Neutral on v5e/v6e.
    o_ref[...] = (jnp.round(x_clip) * s).astype(o_ref.dtype)


# ---------------------------------------------------------------------------
# Tiling helpers
# ---------------------------------------------------------------------------
def _vmem_capacity_bytes():
    try:
        info = pltpu.get_tpu_info()
        cap = getattr(info, "vmem_capacity_bytes", None)
        if cap:
            return int(cap)
    except Exception:
        pass
    return 64 * 1024 * 1024  # conservative default: v7x per-TC VMEM


def _pick_tiling(rows, W, itemsize):
    """Pick (tile_rows, vmem_limit_bytes) for a (rows, W) elementwise slab."""
    sub = {4: 8, 2: 16, 1: 32}.get(itemsize, 8)   # sublane multiple per dtype packing
    vmem_cap = _vmem_capacity_bytes()
    if vmem_cap >= 100 * 1024 * 1024:             # v5e / v6e: 128 MiB physical VMEM
        block_target = 8 * 1024 * 1024
        vmem_ceiling = 96 * 1024 * 1024
    else:                                         # v7x: 64 MiB per TensorCore
        block_target = 4 * 1024 * 1024
        vmem_ceiling = 48 * 1024 * 1024

    row_bytes = W * itemsize
    target_rows = max(sub, ((block_target // row_bytes) // sub) * sub)
    tile_rows = min(rows, target_rows)
    if tile_rows < rows:
        tile_rows = max(sub, (tile_rows // sub) * sub)

    # Never launch a 1-block grid for non-tiny tensors: keep roughly >= 8
    # programs so (a) the in-DMA of block i+1 / out-DMA of block i-1 overlap
    # compute of block i, and (b) the "parallel" axis can shard across v7x's
    # two TensorCores with decent load balance.
    total_bytes = rows * row_bytes
    if total_bytes > (1 * 1024 * 1024) and rows > sub:
        min_grid = min(8, max(2, rows // sub))
        max_tile = pl.cdiv(rows, min_grid)
        max_tile = max(sub, (max_tile // sub) * sub)
        tile_rows = min(tile_rows, max_tile)

    block_bytes = tile_rows * row_bytes
    # in + out, each double-buffered, plus slack.
    vmem_limit = int(min(vmem_ceiling, max(16 * 1024 * 1024, 5 * block_bytes)))
    return tile_rows, vmem_limit


# ---------------------------------------------------------------------------
# Forward implementation
# ---------------------------------------------------------------------------
def _ltq_forward(x, step_size, a_bits, *, donate_input=False):
    valmax = float(2 ** (a_bits - 1) - 1)
    valmin = float(-(2 ** (a_bits - 1)))

    orig_shape = x.shape
    orig_dtype = x.dtype
    itemsize = jnp.dtype(orig_dtype).itemsize
    n = x.size

    step_f32 = jnp.asarray(step_size, dtype=jnp.float32).reshape(())
    inv_f32 = 1.0 / step_f32
    scale_arr = jnp.stack([step_f32, inv_f32])    # [s, 1/s] -> SMEM

    flat = x.reshape(-1)

    # Handle a non-128-aligned element count without padding/copying the whole
    # tensor: kernel runs on the aligned prefix, the <128-element tail is done
    # with plain jnp ops and stitched back on.  Aligned tensors never hit this.
    n_main = (n // 128) * 128
    if n_main == 0:
        rt = flat.astype(jnp.float32) * inv_f32
        out = (jnp.round(jnp.clip(rt, valmin, valmax)) * step_f32).astype(orig_dtype)
        return out.reshape(orig_shape)
    tail = flat[n_main:] if n_main != n else None
    main = flat[:n_main] if n_main != n else flat

    # Lane-dense slab: widest last dim (multiple of 128) dividing the element
    # count.  (Mostly cosmetic — each block is a contiguous slab either way;
    # block bytes and grid length below are the real levers.)
    W = 128
    for cand in (2048, 1024, 512, 256):
        if n_main % cand == 0:
            W = cand
            break
    rows = n_main // W
    x2d = main.reshape(rows, W)

    tile_rows, vmem_limit = _pick_tiling(rows, W, itemsize)
    grid = (pl.cdiv(rows, tile_rows),)   # ragged last block masked by Pallas

    kernel = functools.partial(_ltq_kernel, valmin=valmin, valmax=valmax)

    out2d = pl.pallas_call(
        kernel,
        out_shape=jax.ShapeDtypeStruct((rows, W), orig_dtype),
        grid_spec=pltpu.PrefetchScalarGridSpec(
            num_scalar_prefetch=0,
            grid=grid,
            in_specs=[
                pl.BlockSpec(memory_space=pltpu.SMEM),           # [s, 1/s]
                pl.BlockSpec((tile_rows, W), lambda i: (i, 0)),
            ],
            out_specs=pl.BlockSpec((tile_rows, W), lambda i: (i, 0)),
        ),
        compiler_params=pltpu.CompilerParams(
            dimension_semantics=("parallel",),
            vmem_limit_bytes=vmem_limit,
        ),
        cost_estimate=pl.CostEstimate(
            flops=5 * n_main, transcendentals=0,
            bytes_accessed=2 * n_main * itemsize),
        # x2d -> out2d buffer reuse (same shape/dtype).  Only when the caller
        # donates the activation buffer; otherwise XLA would add a defensive copy.
        input_output_aliases=({1: 0} if donate_input else {}),
    )(scale_arr, x2d)

    out_flat = out2d.reshape(-1)
    if tail is not None:
        rt = tail.astype(jnp.float32) * inv_f32
        tail_out = (jnp.round(jnp.clip(rt, valmin, valmax)) * step_f32).astype(orig_dtype)
        out_flat = jnp.concatenate([out_flat, tail_out])
    return out_flat.reshape(orig_shape)


# ---------------------------------------------------------------------------
# Public entry point (forward only; backward enforced as unimplemented)
# ---------------------------------------------------------------------------
@functools.partial(jax.custom_vjp, nondiff_argnums=(2,))
def ltq_act_quantize(x, step_size, a_bits):
    """Pallas implementation of LTQActQuantizer.forward (lsq.forward)."""
    return _ltq_forward(x, step_size, a_bits)


def _ltq_vjp_fwd(x, step_size, a_bits):
    return _ltq_forward(x, step_size, a_bits), None


def _ltq_vjp_bwd(a_bits, residuals, g):
    # TODO(synk): lsq.backward (STE wrt x + summed per-element step-size grad)
    # is not implemented; fail loudly instead of silently returning zeros.
    raise NotImplementedError(
        "LTQActQuantizer backward (LSQ straight-through gradient) is not "
        "implemented in this Pallas port; forward/inference only.")


ltq_act_quantize.defvjp(_ltq_vjp_fwd, _ltq_vjp_bwd)


def ltq_reference(x, step_size, a_bits):
    valmax = float(2 ** (a_bits - 1) - 1)
    valmin = float(-(2 ** (a_bits - 1)))
    rt = x / step_size
    x_clip = jnp.clip(rt, valmin, valmax)
    return jnp.round(x_clip) * step_size


if __name__ == "__main__":
    key = jax.random.PRNGKey(0)
    a_bits = 4

    # Small NCHW activation, as in the DeiT quantizer.
    x = jax.random.normal(key, (2, 4, 16, 16), dtype=jnp.float32) * 5.0

    # Power-of-two step: 1/s is exact in f32 -> bit-exact vs the reference.
    step = jnp.float32(0.5)
    out = jax.block_until_ready(ltq_act_quantize(x, step, a_bits))
    ref = ltq_reference(x, step, a_bits)
    assert out.shape == x.shape and out.dtype == x.dtype
    assert jnp.array_equal(out, ref), "mismatch vs reference (pow2 step)"

    # Non-power-of-two step: x*(1/s) can differ from x/s by 1 ULP and flip the
    # half-to-even rounding at exact .5 boundaries -> allow rare +/-1 LSB diffs.
    step2 = jnp.float32(0.37)
    out2 = jax.block_until_ready(ltq_act_quantize(x, step2, a_bits))
    ref2 = ltq_reference(x, step2, a_bits)
    diff = jnp.abs(out2 - ref2)
    assert float(jnp.max(diff)) <= float(step2) + 1e-5, "diff larger than 1 LSB"
    n_mismatch = int(jnp.sum(diff > 1e-6))
    assert n_mismatch <= 8, f"too many 1-LSB flips: {n_mismatch}"

    # Non-128-aligned element count exercises the tail path (no full pad copy).
    x3 = jax.random.normal(jax.random.PRNGKey(1), (2, 3, 67), dtype=jnp.float32) * 3.0
    out3 = jax.block_until_ready(ltq_act_quantize(x3, step, a_bits))
    ref3 = ltq_reference(x3, step, a_bits)
    assert jnp.allclose(out3, ref3, atol=1e-6), "mismatch vs reference (tail path)"

    print("KERNEL_OK")
</pallas_src>

<mosaic_0001>
module attributes {stable_mosaic.version = 11 : i64} {
  func.func @_ltq_kernel(%arg0: i32, %arg1: memref<2xf32, #tpu.memory_space<smem>>, %arg2: memref<1x2048xf32, #tpu.memory_space<vmem>>, %arg3: memref<1x2048xf32, #tpu.memory_space<vmem>>) attributes {dimension_semantics = [#tpu.dimension_semantics<parallel>], iteration_bounds = array<i64: 1>, scalar_prefetch = 0 : i64, scratch_operands = 0 : i64, tpu.core_type = #tpu.core_type<tc>, window_params = [{transform_indices = @transform_0, window_bounds = array<i64: 2>}, {transform_indices = @transform_1, window_bounds = array<i64: 1, 2048>}, {transform_indices = @transform_2, window_bounds = array<i64: 1, 2048>}]} {
    %c0 = arith.constant 0 : index
    %0 = memref.load %arg1[%c0] : memref<2xf32, #tpu.memory_space<smem>>
    %c1 = arith.constant 1 : index
    %1 = memref.load %arg1[%c1] : memref<2xf32, #tpu.memory_space<smem>>
    %c0_0 = arith.constant 0 : index
    %c0_1 = arith.constant 0 : index
    %2 = vector.load %arg2[%c0_0, %c0_1] : memref<1x2048xf32, #tpu.memory_space<vmem>>, vector<1x2048xf32>
    %3 = vector.broadcast %1 : f32 to vector<1x2048xf32>
    %4 = arith.mulf %2, %3 : vector<1x2048xf32>
    %cst = arith.constant -8.000000e+00 : f32
    %cst_2 = arith.constant 7.000000e+00 : f32
    %5 = vector.broadcast %cst : f32 to vector<1x2048xf32>
    %6 = arith.maximumf %5, %4 : vector<1x2048xf32>
    %7 = vector.broadcast %cst_2 : f32 to vector<1x2048xf32>
    %8 = arith.minimumf %7, %6 : vector<1x2048xf32>
    %9 = math.roundeven %8 : vector<1x2048xf32>
    %10 = vector.broadcast %0 : f32 to vector<1x2048xf32>
    %11 = arith.mulf %9, %10 : vector<1x2048xf32>
    %c0_3 = arith.constant 0 : index
    %c0_4 = arith.constant 0 : index
    %12 = vector.load %arg3[%c0_3, %c0_4] : memref<1x2048xf32, #tpu.memory_space<vmem>>, vector<1x2048xf32>
    tpu.vector_store %arg3[%c0_3, %c0_4], %11 {strides = array<i32>} : memref<1x2048xf32, #tpu.memory_space<vmem>>, vector<1x2048xf32>,
    return
  }
  func.func @transform_0(%arg0: i32) -> i32 {
    %c0_i32 = arith.constant 0 : i32
    %c0_i32_0 = arith.constant 0 : i32
    return %c0_i32 : i32
  }
  func.func @transform_1(%arg0: i32) -> (i32, i32) {
    %c0_i32 = arith.constant 0 : i32
    %c0_i32_0 = arith.constant 0 : i32
    return %arg0, %c0_i32 : i32, i32
  }
  func.func @transform_2(%arg0: i32) -> (i32, i32) {
    %c0_i32 = arith.constant 0 : i32
    %c0_i32_0 = arith.constant 0 : i32
    return %arg0, %c0_i32 : i32, i32
  }
}

</mosaic_0001>

<bundles_post_ra>
// kernel: tpu_custom_call.1
= control target key start
LH: loop header
LB: loop body
LE: loop exit
PB: predicated region body
PF: predicated region fallthrough
CT: control target
= control target key end

     0   :  { %7 = vsyncpa [#allocation5], 0  ;;  %s189_s0 = inlined_call_operand.hbm [shape: f32[2], index: 0, kind: input, shape index: {}]   ;;  %s190_s1 = inlined_call_operand.hbm [shape: f32[1,2048], index: 1, kind: input, shape index: {}]   ;;  %s191_s2 = inlined_call_operand.hbm [shape: f32[1,2048], index: 2, kind: output, shape index: {}]  }
   0x1   :  { %8 = vsyncpa [#allocation3], 0 }
   0x2   :  { %9 = vsyncpa [#allocation4], 0  ;;  %s75_s11 = scalar_lea.hbm %s189_s0, 16 }
   0x3   :  { %p76_p0 = scmp.ne.s32.totalorder %s189_s0, %s75_s11  ;;  %p79_p1 = scmp.lt.u32.totalorder %s75_s11, %s189_s0 }
   0x5   :  { %p81_p2 = pnand %p79_p1, %p76_p0 }
   0x7   :  { %84 = shalt.err (!%p81_p2)
}
   0x8   :  { %s135_s16 = smov [#allocation2]   ;;  %s136_s19 = smov [#allocation6]  }
   0x9   :  { %17 = dma.hbm_to_smem %s189_s0, 16, %s135_s16, [#allocation5]  }
   0xa   :  { %s24_s20 = sshll.u32 %s136_s19, 4  ;;  %s85_s23 = scalar_lea.hbm %s190_s1, 256  ;;  %s25_s20 = int_to_ptr.vmem [resolvable:$true] %s24_s20 }
   0xb   :  { %p86_p3 = scmp.ne.s32.totalorder %s190_s1, %s85_s23  ;;  %p89_p4 = scmp.lt.u32.totalorder %s85_s23, %s190_s1 }
   0xd   :  { %p91_p5 = pnand %p89_p4, %p86_p3 }
   0xf   :  { %94 = shalt.err (!%p91_p5)
}
  0x10   :  { %s95_s28 = scalar_lea.vmem %s25_s20, 256  ;;  %p100_p7 = scmp.lt.s32.totalorder %s25_s20, %s25_s20 }
  0x11   :  { %p96_p6 = scmp.ne.s32.totalorder %s25_s20, %s95_s28  ;;  %p101_p8 = scmp.lt.s32.totalorder %s95_s28, %s95_s28 }
  0x13   :  { %p102_p9 = por %p101_p8, %p100_p7 }
  0x15   :  { %p103_p10 = pnand %p102_p9, %p96_p6 }
  0x17   :  { %106 = shalt.err (!%p103_p10)
}
  0x18   :  { %27 = dma.hbm_to_vmem [thread:$0]  %s190_s1, 256, %s25_s20, [#allocation3]  }
  0x19   :  { %129 = dma.done.wait [#allocation5], 16  }
  0x1a   :  { %130 = vsyncadd [#allocation5], 4294967280 }
  0x1b   :  { %131 = dma.done.wait [#allocation3], 256  }
  0x1c   :  { %132 = vsyncadd [#allocation3], 4294967040 }
  0x1d   :  { %34 = sfence }
  0x1e   :  { %s69_s30 = sld [smem:[#allocation2 + $0x1]]  ;;  %s35_s3 = sld [smem:[#allocation2]]  ;;  %v37_v0 = vld [vmem:[#allocation6] sm:$0xff]  ;;  %v38_v1 = vld [vmem:[#allocation6 + $0x8] sm:$0xff] }
  0x1f   :  { %s137_s4 = smov [#allocation7]  }
  0x20   :  { %s59_s5 = sshll.u32 %s137_s4, 4  ;;  %s60_s5 = int_to_ptr.vmem [resolvable:$true] %s59_s5 }
  0x21   :  { %s107_s1 = scalar_lea.vmem %s60_s5, 256  ;;  %p112_p12 = scmp.lt.s32.totalorder %s60_s5, %s60_s5 }
  0x22   :  { %p108_p11 = scmp.ne.s32.totalorder %s60_s5, %s107_s1  ;;  %p113_p13 = scmp.lt.s32.totalorder %s107_s1, %s107_s1 }
  0x24   :  { %v39_v2 = vstv %s69_s30  ;;  %v48_v9 = vstv %s35_s3  ;;  %p114_p0 = por %p113_p13, %p112_p12 }
  0x25   :  { %v40_v3 = vmul.f32 %v39_v2, %v37_v0  ;;  %v41_v4 = vmul.f32 %v39_v2, %v38_v1 }
  0x26   :  { %p115_p1 = pnand %p114_p0, %p108_p11 }
  0x27   :  { %v42_v5 = vmax.f32 %v40_v3, -8.0  ;;  %v43_v6 = vmax.f32 %v41_v4, -8.0 }
  0x29   :  { %v44_v7 = vmin.f32 %v42_v5, 7.0  ;;  %v45_v8 = vmin.f32 %v43_v6, 7.0 }
  0x2b   :  { %v70_v10 = vround.rtne.f32 %v44_v7  ;;  %v71_v11 = vround.rtne.f32 %v45_v8 }
  0x2d   :  { %v49_v12 = vmul.f32 %v70_v10, %v48_v9  ;;  %v50_v13 = vmul.f32 %v71_v11, %v48_v9 }
  0x2f   :  { %51 = vst [vmem:[#allocation7] sm:$0xff] %v49_v12  ;;  %52 = vst [vmem:[#allocation7 + $0x8] sm:$0xff] %v50_v13 }
  0x30   :  { %118 = shalt.err (!%p115_p1)
}
  0x31   :  { %s119_s8 = scalar_lea.hbm %s191_s2, 256 }
  0x32   :  { %p120_p2 = scmp.ne.s32.totalorder %s191_s2, %s119_s8  ;;  %p123_p3 = scmp.lt.u32.totalorder %s119_s8, %s191_s2 }
  0x34   :  { %p125_p4 = pnand %p123_p3, %p120_p2 }
  0x36   :  { %128 = shalt.err (!%p125_p4)
}
  0x37   :  { %62 = dma.vmem_to_hbm [thread:$0]  %s60_s5, 256, %s191_s2, [#allocation4]  }
  0x38   :  { %133 = dma.done.wait [#allocation4], 256  }
  0x39   :  { %134 = vsyncadd [#allocation4], 4294967040 }
  0x3a   :  { %66 = vsyncpa [#allocation3], 1 }
  0x3b   :  { %67 = vsyncpa [#allocation4], 1 }
  0x3c   :  { %68 = vsyncpa [#allocation5], 1 }

</bundles_post_ra>
